<compile_context>
chip_gen: v6e
topology: v6e:2x2x1
jax: 0.10.0
libtpu: 0.0.40
codegen_flags: <defaults>
</compile_context>

<pallas_src>
import jax
import jax.numpy as jnp
from jax import lax
from jax.experimental import pallas as pl
from jax.experimental.pallas import tpu as pltpu

EPS = 1e-5
_VMEM_LIMIT = 32 * 1024 * 1024


# --------------------------------------------------------------------------------------
# Kernels
# --------------------------------------------------------------------------------------
def _band_conv(x2d, band_ref, rowshift_ref):
    """3x3 conv in (H, W*Ci) layout: out[h] = sum_dy x2d[h+dy-1] @ band[dy] (zero-padded)."""
    p0 = jnp.dot(x2d, band_ref[0], preferred_element_type=jnp.float32)
    p1 = jnp.dot(x2d, band_ref[1], preferred_element_type=jnp.float32)
    p2 = jnp.dot(x2d, band_ref[2], preferred_element_type=jnp.float32)
    # rowshift[0] = eye(H, k=-1), rowshift[1] = eye(H, k=+1): row shift with zero edges.
    return (p1
            + jnp.dot(rowshift_ref[0], p0, preferred_element_type=jnp.float32)
            + jnp.dot(rowshift_ref[1], p2, preferred_element_type=jnp.float32))


def _write_partial_stats(stat_ref, acc):
    stat_ref[0, 0:1, :] = jnp.sum(acc, axis=0, keepdims=True)
    stat_ref[0, 1:2, :] = jnp.sum(acc * acc, axis=0, keepdims=True)


def _conv_stats_kernel(x_ref, band_ref, rowshift_ref, y_ref, stat_ref):
    acc = _band_conv(x_ref[0], band_ref, rowshift_ref)
    y_ref[0] = acc
    _write_partial_stats(stat_ref, acc)


def _bn_relu_conv_stats_kernel(y_ref, band_ref, rowshift_ref, scale_ref, offset_ref,
                               z_ref, stat_ref):
    a = jnp.maximum(y_ref[0] * scale_ref[...] + offset_ref[...], 0.0)
    acc = _band_conv(a, band_ref, rowshift_ref)
    z_ref[0] = acc
    _write_partial_stats(stat_ref, acc)


def _bn_relu_kernel(z_ref, scale_ref, offset_ref, o_ref):
    o_ref[...] = jnp.maximum(z_ref[...] * scale_ref[...] + offset_ref[...], 0.0)


# --------------------------------------------------------------------------------------
# Wrapper-side helpers (tiny tensors, built once per call)
# --------------------------------------------------------------------------------------
def _band_matrices(w_hwio, width):
    """HWIO (3,3,Ci,Co) -> (3, W*Ci, W*Co) block-tridiagonal matrices, one per dy.

    B_dy[w_in*Ci+ci, w_out*Co+co] = w[dy, w_in-w_out+1, ci, co] inside the band, else 0,
    i.e. the dx taps and the width-edge zero padding are folded into the weights.
    """
    mats = []
    for dy in range(3):
        m = sum(jnp.kron(jnp.eye(width, k=1 - dx, dtype=w_hwio.dtype), w_hwio[dy, dx])
                for dx in range(3))
        mats.append(m)
    return jnp.stack(mats)


def _bn_scale_offset(stats, gamma, beta, n, width, channels, count):
    """(N, 2, W*C) per-image partials -> lane-tiled (1, W*C) BN scale / offset."""
    s = stats[:, 0, :].reshape(n, width, channels).sum(axis=(0, 1))
    sq = stats[:, 1, :].reshape(n, width, channels).sum(axis=(0, 1))
    mean = s / count
    var = jnp.maximum(sq / count - mean * mean, 0.0)      # biased var (PyTorch BN norm)
    scale = gamma * lax.rsqrt(var + EPS)
    offset = beta - scale * mean
    wc = width * channels
    return jnp.tile(scale, width).reshape(1, wc), jnp.tile(offset, width).reshape(1, wc)


# --------------------------------------------------------------------------------------
# Public entry point
# --------------------------------------------------------------------------------------
@jax.jit
def double_conv_pallas(x_nchw, params):
    """x_nchw: (N, Cin, H, W) f32 -> (N, Cout, H, W) f32, training-mode BN semantics."""
    w1, _b1, g1, be1, w2, _b2, g2, be2 = params   # conv biases cancel in training-mode BN
    n, cin, h, w = x_nchw.shape
    cout = w1.shape[-1]
    wci, wco = w * cin, w * cout
    count = float(n * h * w)
    # TODO(synk): PyTorch training-mode BatchNorm also updates running_mean/running_var
    # buffers as a side effect; only the forward output is produced here.

    cparams = pltpu.CompilerParams(dimension_semantics=("parallel",),
                                   vmem_limit_bytes=_VMEM_LIMIT)

    # NCHW -> (N, H, W*Cin): channels folded into lanes, no spatial padding copy.
    x2d = jnp.transpose(x_nchw, (0, 2, 3, 1)).reshape(n, h, wci)

    band1 = _band_matrices(w1, w)                                   # (3, W*Cin, W*Cout)
    band2 = _band_matrices(w2, w)                                   # (3, W*Cout, W*Cout)
    rowshift = jnp.stack([jnp.eye(h, k=-1, dtype=jnp.float32),
                          jnp.eye(h, k=1, dtype=jnp.float32)])      # (2, H, H)

    # ---- K1: conv1 (bias-free) + partial BN1 stats ------------------------------------
    y1, st1 = pl.pallas_call(
        _conv_stats_kernel,
        out_shape=(jax.ShapeDtypeStruct((n, h, wco), jnp.float32),
                   jax.ShapeDtypeStruct((n, 2, wco), jnp.float32)),
        grid=(n,),
        in_specs=[pl.BlockSpec((1, h, wci), lambda i: (i, 0, 0)),
                  pl.BlockSpec((3, wci, wco), lambda i: (0, 0, 0)),
                  pl.BlockSpec((2, h, h), lambda i: (0, 0, 0))],
        out_specs=(pl.BlockSpec((1, h, wco), lambda i: (i, 0, 0)),
                   pl.BlockSpec((1, 2, wco), lambda i: (i, 0, 0))),
        compiler_params=cparams,
    )(x2d, band1, rowshift)

    sc1, of1 = _bn_scale_offset(st1, g1, be1, n, w, cout, count)

    # ---- K2: bn1 affine + relu + conv2 (bias-free) + partial BN2 stats -----------------
    z, st2 = pl.pallas_call(
        _bn_relu_conv_stats_kernel,
        out_shape=(jax.ShapeDtypeStruct((n, h, wco), jnp.float32),
                   jax.ShapeDtypeStruct((n, 2, wco), jnp.float32)),
        grid=(n,),
        in_specs=[pl.BlockSpec((1, h, wco), lambda i: (i, 0, 0)),
                  pl.BlockSpec((3, wco, wco), lambda i: (0, 0, 0)),
                  pl.BlockSpec((2, h, h), lambda i: (0, 0, 0)),
                  pl.BlockSpec((1, wco), lambda i: (0, 0)),
                  pl.BlockSpec((1, wco), lambda i: (0, 0))],
        out_specs=(pl.BlockSpec((1, h, wco), lambda i: (i, 0, 0)),
                   pl.BlockSpec((1, 2, wco), lambda i: (i, 0, 0))),
        compiler_params=cparams,
    )(y1, band2, rowshift, sc1, of1)

    sc2, of2 = _bn_scale_offset(st2, g2, be2, n, w, cout, count)

    # ---- K3: bn2 affine + relu (elementwise, tiled over N and H row tiles) -------------
    th = 8 if h % 8 == 0 else h
    out2d = pl.pallas_call(
        _bn_relu_kernel,
        out_shape=jax.ShapeDtypeStruct((n, h, wco), jnp.float32),
        grid=(n, h // th),
        in_specs=[pl.BlockSpec((1, th, wco), lambda i, j: (i, j, 0)),
                  pl.BlockSpec((1, wco), lambda i, j: (0, 0)),
                  pl.BlockSpec((1, wco), lambda i, j: (0, 0))],
        out_specs=pl.BlockSpec((1, th, wco), lambda i, j: (i, j, 0)),
        compiler_params=pltpu.CompilerParams(
            dimension_semantics=("parallel", "parallel"),
            vmem_limit_bytes=_VMEM_LIMIT),
    )(z, sc2, of2)

    return jnp.transpose(out2d.reshape(n, h, w, cout), (0, 3, 1, 2))


# --------------------------------------------------------------------------------------
# Pure-JAX reference (PyTorch semantics: conv WITH bias, training-mode BN, ReLU)
# --------------------------------------------------------------------------------------
def double_conv_ref(x_nchw, params):
    w1, b1, g1, be1, w2, b2, g2, be2 = params
    x = jnp.transpose(x_nchw, (0, 2, 3, 1))

    def block(x, w, b, g, be):
        y = lax.conv_general_dilated(
            x, w, window_strides=(1, 1), padding=((1, 1), (1, 1)),
            dimension_numbers=('NHWC', 'HWIO', 'NHWC')) + b
        mean = jnp.mean(y, axis=(0, 1, 2), keepdims=True)
        var = jnp.mean((y - mean) ** 2, axis=(0, 1, 2), keepdims=True)
        return jnp.maximum((y - mean) * lax.rsqrt(var + EPS) * g + be, 0.0)

    y = block(x, w1, b1, g1, be1)
    z = block(y, w2, b2, g2, be2)
    return jnp.transpose(z, (0, 3, 1, 2))


def init_params(key, in_channels, out_channels):
    ks = jax.random.split(key, 4)
    scale1 = 1.0 / jnp.sqrt(in_channels * 9.0)
    scale2 = 1.0 / jnp.sqrt(out_channels * 9.0)
    w1 = jax.random.uniform(ks[0], (3, 3, in_channels, out_channels),
                            jnp.float32, -scale1, scale1)
    b1 = jax.random.uniform(ks[1], (out_channels,), jnp.float32, -scale1, scale1)
    w2 = jax.random.uniform(ks[2], (3, 3, out_channels, out_channels),
                            jnp.float32, -scale2, scale2)
    b2 = jax.random.uniform(ks[3], (out_channels,), jnp.float32, -scale2, scale2)
    g1 = jnp.ones((out_channels,), jnp.float32)
    be1 = jnp.zeros((out_channels,), jnp.float32)
    g2 = jnp.ones((out_channels,), jnp.float32)
    be2 = jnp.zeros((out_channels,), jnp.float32)
    return (w1, b1, g1, be1, w2, b2, g2, be2)


if __name__ == "__main__":
    key = jax.random.PRNGKey(0)
    k_x, k_p = jax.random.split(key)

    N, Cin, H, W = 2, 4, 16, 16
    Cout = 8

    x = jax.random.normal(k_x, (N, Cin, H, W), jnp.float32)
    params = init_params(k_p, Cin, Cout)

    out = jax.block_until_ready(double_conv_pallas(x, params))
    ref = jax.block_until_ready(double_conv_ref(x, params))

    assert out.shape == (N, Cout, H, W)
    assert jnp.allclose(out, ref, rtol=1e-4, atol=1e-4), "mismatch vs reference"
    print("KERNEL_OK")
</pallas_src>

<mosaic_0001>
module attributes {stable_mosaic.version = 11 : i64} {
  func.func @_conv_stats_kernel(%arg0: i32, %arg1: memref<1x16x64xf32, #tpu.memory_space<vmem>>, %arg2: memref<3x64x128xf32, #tpu.memory_space<vmem>>, %arg3: memref<2x16x16xf32, #tpu.memory_space<vmem>>, %arg4: memref<1x16x128xf32, #tpu.memory_space<vmem>>, %arg5: memref<1x2x128xf32, #tpu.memory_space<vmem>>) attributes {dimension_semantics = [#tpu.dimension_semantics<parallel>], iteration_bounds = array<i64: 2>, scalar_prefetch = 0 : i64, scratch_operands = 0 : i64, tpu.core_type = #tpu.core_type<tc>, window_params = [{transform_indices = @transform_0, window_bounds = array<i64: 1, 16, 64>}, {pipeline_mode = #tpu.pipeline_mode<synchronous>, transform_indices = @transform_1, window_bounds = array<i64: 3, 64, 128>}, {pipeline_mode = #tpu.pipeline_mode<synchronous>, transform_indices = @transform_2, window_bounds = array<i64: 2, 16, 16>}, {transform_indices = @transform_3, window_bounds = array<i64: 1, 16, 128>}, {transform_indices = @transform_4, window_bounds = array<i64: 1, 2, 128>}]} {
    %c0 = arith.constant 0 : index
    %c0_0 = arith.constant 0 : index
    %c0_1 = arith.constant 0 : index
    %0 = vector.load %arg1[%c0, %c0_0, %c0_1] : memref<1x16x64xf32, #tpu.memory_space<vmem>>, vector<1x16x64xf32>
    %1 = vector.shape_cast %0 : vector<1x16x64xf32> to vector<16x64xf32>
    %c0_2 = arith.constant 0 : index
    %c0_3 = arith.constant 0 : index
    %c0_4 = arith.constant 0 : index
    %2 = vector.load %arg2[%c0_2, %c0_3, %c0_4] : memref<3x64x128xf32, #tpu.memory_space<vmem>>, vector<1x64x128xf32>
    %3 = vector.shape_cast %2 : vector<1x64x128xf32> to vector<64x128xf32>
    %cst = arith.constant dense<0.000000e+00> : vector<16x128xf32>
    %4 = tpu.matmul %1, %3, %cst {dimension_numbers = #tpu.dot_dimension_numbers<[1], [0], [0], [1], [0, 0, 1, 1], [], []>} : vector<16x64xf32>, vector<64x128xf32>, vector<16x128xf32> -> vector<16x128xf32>
    %c1 = arith.constant 1 : index
    %c0_5 = arith.constant 0 : index
    %c0_6 = arith.constant 0 : index
    %5 = vector.load %arg2[%c1, %c0_5, %c0_6] : memref<3x64x128xf32, #tpu.memory_space<vmem>>, vector<1x64x128xf32>
    %6 = vector.shape_cast %5 : vector<1x64x128xf32> to vector<64x128xf32>
    %cst_7 = arith.constant dense<0.000000e+00> : vector<16x128xf32>
    %7 = tpu.matmul %1, %6, %cst_7 {dimension_numbers = #tpu.dot_dimension_numbers<[1], [0], [0], [1], [0, 0, 1, 1], [], []>} : vector<16x64xf32>, vector<64x128xf32>, vector<16x128xf32> -> vector<16x128xf32>
    %c2 = arith.constant 2 : index
    %c0_8 = arith.constant 0 : index
    %c0_9 = arith.constant 0 : index
    %8 = vector.load %arg2[%c2, %c0_8, %c0_9] : memref<3x64x128xf32, #tpu.memory_space<vmem>>, vector<1x64x128xf32>
    %9 = vector.shape_cast %8 : vector<1x64x128xf32> to vector<64x128xf32>
    %cst_10 = arith.constant dense<0.000000e+00> : vector<16x128xf32>
    %10 = tpu.matmul %1, %9, %cst_10 {dimension_numbers = #tpu.dot_dimension_numbers<[1], [0], [0], [1], [0, 0, 1, 1], [], []>} : vector<16x64xf32>, vector<64x128xf32>, vector<16x128xf32> -> vector<16x128xf32>
    %c0_11 = arith.constant 0 : index
    %c0_12 = arith.constant 0 : index
    %c0_13 = arith.constant 0 : index
    %11 = vector.load %arg3[%c0_11, %c0_12, %c0_13] : memref<2x16x16xf32, #tpu.memory_space<vmem>>, vector<1x16x16xf32>
    %12 = vector.shape_cast %11 : vector<1x16x16xf32> to vector<16x16xf32>
    %cst_14 = arith.constant dense<0.000000e+00> : vector<16x128xf32>
    %13 = tpu.matmul %12, %4, %cst_14 {dimension_numbers = #tpu.dot_dimension_numbers<[1], [0], [0], [1], [0, 0, 1, 1], [], []>} : vector<16x16xf32>, vector<16x128xf32>, vector<16x128xf32> -> vector<16x128xf32>
    %14 = arith.addf %7, %13 : vector<16x128xf32>
    %c1_15 = arith.constant 1 : index
    %c0_16 = arith.constant 0 : index
    %c0_17 = arith.constant 0 : index
    %15 = vector.load %arg3[%c1_15, %c0_16, %c0_17] : memref<2x16x16xf32, #tpu.memory_space<vmem>>, vector<1x16x16xf32>
    %16 = vector.shape_cast %15 : vector<1x16x16xf32> to vector<16x16xf32>
    %cst_18 = arith.constant dense<0.000000e+00> : vector<16x128xf32>
    %17 = tpu.matmul %16, %10, %cst_18 {dimension_numbers = #tpu.dot_dimension_numbers<[1], [0], [0], [1], [0, 0, 1, 1], [], []>} : vector<16x16xf32>, vector<16x128xf32>, vector<16x128xf32> -> vector<16x128xf32>
    %18 = arith.addf %14, %17 : vector<16x128xf32>
    %c0_19 = arith.constant 0 : index
    %c0_20 = arith.constant 0 : index
    %c0_21 = arith.constant 0 : index
    %19 = vector.load %arg4[%c0_19, %c0_20, %c0_21] : memref<1x16x128xf32, #tpu.memory_space<vmem>>, vector<1x16x128xf32>
    %20 = vector.shape_cast %19 : vector<1x16x128xf32> to vector<16x128xf32>
    %21 = vector.shape_cast %18 : vector<16x128xf32> to vector<1x16x128xf32>
    tpu.vector_store %arg4[%c0_19, %c0_20, %c0_21], %21 {strides = array<i32>} : memref<1x16x128xf32, #tpu.memory_space<vmem>>, vector<1x16x128xf32>,
    %cst_22 = arith.constant dense<0.000000e+00> : vector<128xf32>
    %22 = vector.multi_reduction <add>, %18, %cst_22 [0] : vector<16x128xf32> to vector<128xf32>
    %23 = vector.shape_cast %22 : vector<128xf32> to vector<1x128xf32>
    %c0_23 = arith.constant 0 : index
    %c0_24 = arith.constant 0 : index
    %c0_25 = arith.constant 0 : index
    %24 = vector.load %arg5[%c0_23, %c0_24, %c0_25] : memref<1x2x128xf32, #tpu.memory_space<vmem>>, vector<1x1x128xf32>
    %25 = vector.shape_cast %24 : vector<1x1x128xf32> to vector<1x128xf32>
    %26 = vector.shape_cast %23 : vector<1x128xf32> to vector<1x1x128xf32>
    tpu.vector_store %arg5[%c0_23, %c0_24, %c0_25], %26 {strides = array<i32>} : memref<1x2x128xf32, #tpu.memory_space<vmem>>, vector<1x1x128xf32>,
    %27 = arith.mulf %18, %18 : vector<16x128xf32>
    %cst_26 = arith.constant dense<0.000000e+00> : vector<128xf32>
    %28 = vector.multi_reduction <add>, %27, %cst_26 [0] : vector<16x128xf32> to vector<128xf32>
    %29 = vector.shape_cast %28 : vector<128xf32> to vector<1x128xf32>
    %c0_27 = arith.constant 0 : index
    %c1_28 = arith.constant 1 : index
    %c0_29 = arith.constant 0 : index
    %30 = vector.load %arg5[%c0_27, %c1_28, %c0_29] : memref<1x2x128xf32, #tpu.memory_space<vmem>>, vector<1x1x128xf32>
    %31 = vector.shape_cast %30 : vector<1x1x128xf32> to vector<1x128xf32>
    %32 = vector.shape_cast %29 : vector<1x128xf32> to vector<1x1x128xf32>
    tpu.vector_store %arg5[%c0_27, %c1_28, %c0_29], %32 {strides = array<i32>} : memref<1x2x128xf32, #tpu.memory_space<vmem>>, vector<1x1x128xf32>,
    return
  }
  func.func @transform_0(%arg0: i32) -> (i32, i32, i32) {
    %c0_i32 = arith.constant 0 : i32
    %c0_i32_0 = arith.constant 0 : i32
    %c0_i32_1 = arith.constant 0 : i32
    return %arg0, %c0_i32, %c0_i32_0 : i32, i32, i32
  }
  func.func @transform_1(%arg0: i32) -> (i32, i32, i32) {
    %c0_i32 = arith.constant 0 : i32
    %c0_i32_0 = arith.constant 0 : i32
    %c0_i32_1 = arith.constant 0 : i32
    %c0_i32_2 = arith.constant 0 : i32
    return %c0_i32, %c0_i32_0, %c0_i32_1 : i32, i32, i32
  }
  func.func @transform_2(%arg0: i32) -> (i32, i32, i32) {
    %c0_i32 = arith.constant 0 : i32
    %c0_i32_0 = arith.constant 0 : i32
    %c0_i32_1 = arith.constant 0 : i32
    %c0_i32_2 = arith.constant 0 : i32
    return %c0_i32, %c0_i32_0, %c0_i32_1 : i32, i32, i32
  }
  func.func @transform_3(%arg0: i32) -> (i32, i32, i32) {
    %c0_i32 = arith.constant 0 : i32
    %c0_i32_0 = arith.constant 0 : i32
    %c0_i32_1 = arith.constant 0 : i32
    return %arg0, %c0_i32, %c0_i32_0 : i32, i32, i32
  }
  func.func @transform_4(%arg0: i32) -> (i32, i32, i32) {
    %c0_i32 = arith.constant 0 : i32
    %c0_i32_0 = arith.constant 0 : i32
    %c0_i32_1 = arith.constant 0 : i32
    return %arg0, %c0_i32, %c0_i32_0 : i32, i32, i32
  }
}

module attributes {stable_mosaic.version = 11 : i64} {
  func.func @_bn_relu_conv_stats_kernel(%arg0: i32, %arg1: memref<1x16x128xf32, #tpu.memory_space<vmem>>, %arg2: memref<3x128x128xf32, #tpu.memory_space<vmem>>, %arg3: memref<2x16x16xf32, #tpu.memory_space<vmem>>, %arg4: memref<1x128xf32, #tpu.memory_space<vmem>>, %arg5: memref<1x128xf32, #tpu.memory_space<vmem>>, %arg6: memref<1x16x128xf32, #tpu.memory_space<vmem>>, %arg7: memref<1x2x128xf32, #tpu.memory_space<vmem>>) attributes {dimension_semantics = [#tpu.dimension_semantics<parallel>], iteration_bounds = array<i64: 2>, scalar_prefetch = 0 : i64, scratch_operands = 0 : i64, tpu.core_type = #tpu.core_type<tc>, window_params = [{transform_indices = @transform_0, window_bounds = array<i64: 1, 16, 128>}, {pipeline_mode = #tpu.pipeline_mode<synchronous>, transform_indices = @transform_1, window_bounds = array<i64: 3, 128, 128>}, {pipeline_mode = #tpu.pipeline_mode<synchronous>, transform_indices = @transform_2, window_bounds = array<i64: 2, 16, 16>}, {pipeline_mode = #tpu.pipeline_mode<synchronous>, transform_indices = @transform_3, window_bounds = array<i64: 1, 128>}, {pipeline_mode = #tpu.pipeline_mode<synchronous>, transform_indices = @transform_4, window_bounds = array<i64: 1, 128>}, {transform_indices = @transform_5, window_bounds = array<i64: 1, 16, 128>}, {transform_indices = @transform_6, window_bounds = array<i64: 1, 2, 128>}]} {
    %c0 = arith.constant 0 : index
    %c0_0 = arith.constant 0 : index
    %c0_1 = arith.constant 0 : index
    %0 = vector.load %arg1[%c0, %c0_0, %c0_1] : memref<1x16x128xf32, #tpu.memory_space<vmem>>, vector<1x16x128xf32>
    %1 = vector.shape_cast %0 : vector<1x16x128xf32> to vector<16x128xf32>
    %c0_2 = arith.constant 0 : index
    %c0_3 = arith.constant 0 : index
    %2 = vector.load %arg4[%c0_2, %c0_3] : memref<1x128xf32, #tpu.memory_space<vmem>>, vector<1x128xf32>
    %3 = vector.broadcast %2 : vector<1x128xf32> to vector<16x128xf32>
    %4 = arith.mulf %1, %3 : vector<16x128xf32>
    %c0_4 = arith.constant 0 : index
    %c0_5 = arith.constant 0 : index
    %5 = vector.load %arg5[%c0_4, %c0_5] : memref<1x128xf32, #tpu.memory_space<vmem>>, vector<1x128xf32>
    %6 = vector.broadcast %5 : vector<1x128xf32> to vector<16x128xf32>
    %7 = arith.addf %4, %6 : vector<16x128xf32>
    %cst = arith.constant 0.000000e+00 : f32
    %8 = vector.broadcast %cst : f32 to vector<16x128xf32>
    %9 = arith.maximumf %7, %8 : vector<16x128xf32>
    %c0_6 = arith.constant 0 : index
    %c0_7 = arith.constant 0 : index
    %c0_8 = arith.constant 0 : index
    %10 = vector.load %arg2[%c0_6, %c0_7, %c0_8] : memref<3x128x128xf32, #tpu.memory_space<vmem>>, vector<1x128x128xf32>
    %11 = vector.shape_cast %10 : vector<1x128x128xf32> to vector<128x128xf32>
    %cst_9 = arith.constant dense<0.000000e+00> : vector<16x128xf32>
    %12 = tpu.matmul %9, %11, %cst_9 {dimension_numbers = #tpu.dot_dimension_numbers<[1], [0], [0], [1], [0, 0, 1, 1], [], []>} : vector<16x128xf32>, vector<128x128xf32>, vector<16x128xf32> -> vector<16x128xf32>
    %c1 = arith.constant 1 : index
    %c0_10 = arith.constant 0 : index
    %c0_11 = arith.constant 0 : index
    %13 = vector.load %arg2[%c1, %c0_10, %c0_11] : memref<3x128x128xf32, #tpu.memory_space<vmem>>, vector<1x128x128xf32>
    %14 = vector.shape_cast %13 : vector<1x128x128xf32> to vector<128x128xf32>
    %cst_12 = arith.constant dense<0.000000e+00> : vector<16x128xf32>
    %15 = tpu.matmul %9, %14, %cst_12 {dimension_numbers = #tpu.dot_dimension_numbers<[1], [0], [0], [1], [0, 0, 1, 1], [], []>} : vector<16x128xf32>, vector<128x128xf32>, vector<16x128xf32> -> vector<16x128xf32>
    %c2 = arith.constant 2 : index
    %c0_13 = arith.constant 0 : index
    %c0_14 = arith.constant 0 : index
    %16 = vector.load %arg2[%c2, %c0_13, %c0_14] : memref<3x128x128xf32, #tpu.memory_space<vmem>>, vector<1x128x128xf32>
    %17 = vector.shape_cast %16 : vector<1x128x128xf32> to vector<128x128xf32>
    %cst_15 = arith.constant dense<0.000000e+00> : vector<16x128xf32>
    %18 = tpu.matmul %9, %17, %cst_15 {dimension_numbers = #tpu.dot_dimension_numbers<[1], [0], [0], [1], [0, 0, 1, 1], [], []>} : vector<16x128xf32>, vector<128x128xf32>, vector<16x128xf32> -> vector<16x128xf32>
    %c0_16 = arith.constant 0 : index
    %c0_17 = arith.constant 0 : index
    %c0_18 = arith.constant 0 : index
    %19 = vector.load %arg3[%c0_16, %c0_17, %c0_18] : memref<2x16x16xf32, #tpu.memory_space<vmem>>, vector<1x16x16xf32>
    %20 = vector.shape_cast %19 : vector<1x16x16xf32> to vector<16x16xf32>
    %cst_19 = arith.constant dense<0.000000e+00> : vector<16x128xf32>
    %21 = tpu.matmul %20, %12, %cst_19 {dimension_numbers = #tpu.dot_dimension_numbers<[1], [0], [0], [1], [0, 0, 1, 1], [], []>} : vector<16x16xf32>, vector<16x128xf32>, vector<16x128xf32> -> vector<16x128xf32>
    %22 = arith.addf %15, %21 : vector<16x128xf32>
    %c1_20 = arith.constant 1 : index
    %c0_21 = arith.constant 0 : index
    %c0_22 = arith.constant 0 : index
    %23 = vector.load %arg3[%c1_20, %c0_21, %c0_22] : memref<2x16x16xf32, #tpu.memory_space<vmem>>, vector<1x16x16xf32>
    %24 = vector.shape_cast %23 : vector<1x16x16xf32> to vector<16x16xf32>
    %cst_23 = arith.constant dense<0.000000e+00> : vector<16x128xf32>
    %25 = tpu.matmul %24, %18, %cst_23 {dimension_numbers = #tpu.dot_dimension_numbers<[1], [0], [0], [1], [0, 0, 1, 1], [], []>} : vector<16x16xf32>, vector<16x128xf32>, vector<16x128xf32> -> vector<16x128xf32>
    %26 = arith.addf %22, %25 : vector<16x128xf32>
    %c0_24 = arith.constant 0 : index
    %c0_25 = arith.constant 0 : index
    %c0_26 = arith.constant 0 : index
    %27 = vector.load %arg6[%c0_24, %c0_25, %c0_26] : memref<1x16x128xf32, #tpu.memory_space<vmem>>, vector<1x16x128xf32>
    %28 = vector.shape_cast %27 : vector<1x16x128xf32> to vector<16x128xf32>
    %29 = vector.shape_cast %26 : vector<16x128xf32> to vector<1x16x128xf32>
    tpu.vector_store %arg6[%c0_24, %c0_25, %c0_26], %29 {strides = array<i32>} : memref<1x16x128xf32, #tpu.memory_space<vmem>>, vector<1x16x128xf32>,
    %cst_27 = arith.constant dense<0.000000e+00> : vector<128xf32>
    %30 = vector.multi_reduction <add>, %26, %cst_27 [0] : vector<16x128xf32> to vector<128xf32>
    %31 = vector.shape_cast %30 : vector<128xf32> to vector<1x128xf32>
    %c0_28 = arith.constant 0 : index
    %c0_29 = arith.constant 0 : index
    %c0_30 = arith.constant 0 : index
    %32 = vector.load %arg7[%c0_28, %c0_29, %c0_30] : memref<1x2x128xf32, #tpu.memory_space<vmem>>, vector<1x1x128xf32>
    %33 = vector.shape_cast %32 : vector<1x1x128xf32> to vector<1x128xf32>
    %34 = vector.shape_cast %31 : vector<1x128xf32> to vector<1x1x128xf32>
    tpu.vector_store %arg7[%c0_28, %c0_29, %c0_30], %34 {strides = array<i32>} : memref<1x2x128xf32, #tpu.memory_space<vmem>>, vector<1x1x128xf32>,
    %35 = arith.mulf %26, %26 : vector<16x128xf32>
    %cst_31 = arith.constant dense<0.000000e+00> : vector<128xf32>
    %36 = vector.multi_reduction <add>, %35, %cst_31 [0] : vector<16x128xf32> to vector<128xf32>
    %37 = vector.shape_cast %36 : vector<128xf32> to vector<1x128xf32>
    %c0_32 = arith.constant 0 : index
    %c1_33 = arith.constant 1 : index
    %c0_34 = arith.constant 0 : index
    %38 = vector.load %arg7[%c0_32, %c1_33, %c0_34] : memref<1x2x128xf32, #tpu.memory_space<vmem>>, vector<1x1x128xf32>
    %39 = vector.shape_cast %38 : vector<1x1x128xf32> to vector<1x128xf32>
    %40 = vector.shape_cast %37 : vector<1x128xf32> to vector<1x1x128xf32>
    tpu.vector_store %arg7[%c0_32, %c1_33, %c0_34], %40 {strides = array<i32>} : memref<1x2x128xf32, #tpu.memory_space<vmem>>, vector<1x1x128xf32>,
    return
  }
  func.func @transform_0(%arg0: i32) -> (i32, i32, i32) {
    %c0_i32 = arith.constant 0 : i32
    %c0_i32_0 = arith.constant 0 : i32
    %c0_i32_1 = arith.constant 0 : i32
    return %arg0, %c0_i32, %c0_i32_0 : i32, i32, i32
  }
  func.func @transform_1(%arg0: i32) -> (i32, i32, i32) {
    %c0_i32 = arith.constant 0 : i32
    %c0_i32_0 = arith.constant 0 : i32
    %c0_i32_1 = arith.constant 0 : i32
    %c0_i32_2 = arith.constant 0 : i32
    return %c0_i32, %c0_i32_0, %c0_i32_1 : i32, i32, i32
  }
  func.func @transform_2(%arg0: i32) -> (i32, i32, i32) {
    %c0_i32 = arith.constant 0 : i32
    %c0_i32_0 = arith.constant 0 : i32
    %c0_i32_1 = arith.constant 0 : i32
    %c0_i32_2 = arith.constant 0 : i32
    return %c0_i32, %c0_i32_0, %c0_i32_1 : i32, i32, i32
  }
  func.func @transform_3(%arg0: i32) -> (i32, i32) {
    %c0_i32 = arith.constant 0 : i32
    %c0_i32_0 = arith.constant 0 : i32
    %c0_i32_1 = arith.constant 0 : i32
    return %c0_i32, %c0_i32_0 : i32, i32
  }
  func.func @transform_4(%arg0: i32) -> (i32, i32) {
    %c0_i32 = arith.constant 0 : i32
    %c0_i32_0 = arith.constant 0 : i32
    %c0_i32_1 = arith.constant 0 : i32
    return %c0_i32, %c0_i32_0 : i32, i32
  }
  func.func @transform_5(%arg0: i32) -> (i32, i32, i32) {
    %c0_i32 = arith.constant 0 : i32
    %c0_i32_0 = arith.constant 0 : i32
    %c0_i32_1 = arith.constant 0 : i32
    return %arg0, %c0_i32, %c0_i32_0 : i32, i32, i32
  }
  func.func @transform_6(%arg0: i32) -> (i32, i32, i32) {
    %c0_i32 = arith.constant 0 : i32
    %c0_i32_0 = arith.constant 0 : i32
    %c0_i32_1 = arith.constant 0 : i32
    return %arg0, %c0_i32, %c0_i32_0 : i32, i32, i32
  }
}

module attributes {stable_mosaic.version = 11 : i64} {
  func.func @_bn_relu_kernel(%arg0: i32, %arg1: i32, %arg2: memref<1x8x128xf32, #tpu.memory_space<vmem>>, %arg3: memref<1x128xf32, #tpu.memory_space<vmem>>, %arg4: memref<1x128xf32, #tpu.memory_space<vmem>>, %arg5: memref<1x8x128xf32, #tpu.memory_space<vmem>>) attributes {dimension_semantics = [#tpu.dimension_semantics<parallel>, #tpu.dimension_semantics<parallel>], iteration_bounds = array<i64: 2, 2>, scalar_prefetch = 0 : i64, scratch_operands = 0 : i64, tpu.core_type = #tpu.core_type<tc>, window_params = [{transform_indices = @transform_0, window_bounds = array<i64: 1, 8, 128>}, {pipeline_mode = #tpu.pipeline_mode<synchronous>, transform_indices = @transform_1, window_bounds = array<i64: 1, 128>}, {pipeline_mode = #tpu.pipeline_mode<synchronous>, transform_indices = @transform_2, window_bounds = array<i64: 1, 128>}, {transform_indices = @transform_3, window_bounds = array<i64: 1, 8, 128>}]} {
    %c0 = arith.constant 0 : index
    %c0_0 = arith.constant 0 : index
    %c0_1 = arith.constant 0 : index
    %0 = vector.load %arg2[%c0, %c0_0, %c0_1] : memref<1x8x128xf32, #tpu.memory_space<vmem>>, vector<1x8x128xf32>
    %c0_2 = arith.constant 0 : index
    %c0_3 = arith.constant 0 : index
    %1 = vector.load %arg3[%c0_2, %c0_3] : memref<1x128xf32, #tpu.memory_space<vmem>>, vector<1x128xf32>
    %2 = vector.shape_cast %1 : vector<1x128xf32> to vector<1x1x128xf32>
    %3 = vector.broadcast %2 : vector<1x1x128xf32> to vector<1x8x128xf32>
    %4 = arith.mulf %0, %3 : vector<1x8x128xf32>
    %c0_4 = arith.constant 0 : index
    %c0_5 = arith.constant 0 : index
    %5 = vector.load %arg4[%c0_4, %c0_5] : memref<1x128xf32, #tpu.memory_space<vmem>>, vector<1x128xf32>
    %6 = vector.shape_cast %5 : vector<1x128xf32> to vector<1x1x128xf32>
    %7 = vector.broadcast %6 : vector<1x1x128xf32> to vector<1x8x128xf32>
    %8 = arith.addf %4, %7 : vector<1x8x128xf32>
    %cst = arith.constant 0.000000e+00 : f32
    %9 = vector.broadcast %cst : f32 to vector<1x8x128xf32>
    %10 = arith.maximumf %8, %9 : vector<1x8x128xf32>
    %c0_6 = arith.constant 0 : index
    %c0_7 = arith.constant 0 : index
    %c0_8 = arith.constant 0 : index
    %11 = vector.load %arg5[%c0_6, %c0_7, %c0_8] : memref<1x8x128xf32, #tpu.memory_space<vmem>>, vector<1x8x128xf32>
    tpu.vector_store %arg5[%c0_6, %c0_7, %c0_8], %10 {strides = array<i32>} : memref<1x8x128xf32, #tpu.memory_space<vmem>>, vector<1x8x128xf32>,
    return
  }
  func.func @transform_0(%arg0: i32, %arg1: i32) -> (i32, i32, i32) {
    %c0_i32 = arith.constant 0 : i32
    %c0_i32_0 = arith.constant 0 : i32
    return %arg0, %arg1, %c0_i32 : i32, i32, i32
  }
  func.func @transform_1(%arg0: i32, %arg1: i32) -> (i32, i32) {
    %c0_i32 = arith.constant 0 : i32
    %c0_i32_0 = arith.constant 0 : i32
    %c0_i32_1 = arith.constant 0 : i32
    return %c0_i32, %c0_i32_0 : i32, i32
  }
  func.func @transform_2(%arg0: i32, %arg1: i32) -> (i32, i32) {
    %c0_i32 = arith.constant 0 : i32
    %c0_i32_0 = arith.constant 0 : i32
    %c0_i32_1 = arith.constant 0 : i32
    return %c0_i32, %c0_i32_0 : i32, i32
  }
  func.func @transform_3(%arg0: i32, %arg1: i32) -> (i32, i32, i32) {
    %c0_i32 = arith.constant 0 : i32
    %c0_i32_0 = arith.constant 0 : i32
    return %arg0, %arg1, %c0_i32 : i32, i32, i32
  }
}

</mosaic_0001>

<bundles_post_ra>
// kernel: tile.23
= control target key start
LH: loop header
LB: loop body
LE: loop exit
PB: predicated region body
PF: predicated region fallthrough
CT: control target
= control target key end

     0   :  { %s28_s0 = inlined_call_operand.vmem [shape: f32[8], index: 0, kind: input, shape index: {}]   ;;  %s29_s1 = inlined_call_operand.vmem [shape: f32[16,8], index: 1, kind: output, shape index: {}]  }
   0x1   :  { %v4_v0 = vld [vmem:[%s28_s0] ss:$0 sm:$0xff] }
   0x2   :  { %5 = vst [vmem:[%s29_s1] sm:$0xff] %v4_v0  ;;  %8 = vst [vmem:[%s29_s1 + $0x8] sm:$0xff] %v4_v0 }

// kernel: tile.24
= control target key start
LH: loop header
LB: loop body
LE: loop exit
PB: predicated region body
PF: predicated region fallthrough
CT: control target
= control target key end

     0   :  { %s133_s10 = smov 120   ;;  %s134_s11 = smov 104   ;;  %vm3_vm0 = vcmask 64512   ;;  %vm9_vm1 = vcmask 1048512   ;;  %vm15_vm2 = vcmask 982912   ;;  %vm21_vm3 = vcmask 917312   ;;  %s209_s0 = inlined_call_operand.vmem [shape: f32[16,8], index: 0, kind: input, shape index: {}]   ;;  %s210_s1 = inlined_call_operand.vmem [shape: f32[1,128], index: 1, kind: output, shape index: {}]  }
   0x1   :  { %v103_v0 = vld [vmem:[%s209_s0 + $0xf] sm:$0x1]   ;;  %v105_v1 = vld [vmem:[%s209_s0 + $0xd] sm:$0x1]   ;;  %v104_v2 = vld [vmem:[%s209_s0 + $0xe] sm:$0x1]  }
   0x2   :  { %7 = vrot.lane.b32.xlu0 %v103_v0, %s133_s10  ;;  %19 = vrot.lane.b32.xlu1 %v105_v1, %s134_s11  ;;  %v106_v3 = vld [vmem:[%s209_s0 + $0xc] sm:$0x1]   ;;  %s135_s16 = smov 112   ;;  %s136_s17 = smov 96   ;;  %v107_v4 = vld [vmem:[%s209_s0 + $0xb] sm:$0x1]  }
   0x3   :  { %v108_v5 = vld [vmem:[%s209_s0 + $0xa] sm:$0x1]   ;;  %v2_v6 = vld [vmem:[%s209_s0] sm:$0x1]   ;;  %s137_s24 = smov 88   ;;  %s138_s25 = smov 80  }
   0x4   :  { %4 = vst.msk [vmem:[#allocation0] sm:$0x1] %vm3_vm0, %v2_v6   ;;  %v109_v7 = vld [vmem:[%s209_s0 + $0x9] sm:$0x1]   ;;  %v110_v8 = vld [vmem:[%s209_s0 + $0x8] sm:$0x1]  }
   0x5   :  { %s139_s30 = smov 72   ;;  %s140_s2 = smov 64   ;;  %v111_v9 = vld [vmem:[%s209_s0 + $0x7] sm:$0x1]   ;;  %v112_v10 = vld [vmem:[%s209_s0 + $0x6] sm:$0x1]  }
   0x6   :  { %13 = vrot.lane.b32.xlu0 %v104_v2, %s135_s16  ;;  %25 = vrot.lane.b32.xlu1 %v106_v3, %s136_s17  ;;  %s141_s7 = smov 56   ;;  %s142_s8 = smov 48   ;;  %v113_v11 = vld [vmem:[%s209_s0 + $0x5] sm:$0x1]   ;;  %v114_v12 = vld [vmem:[%s209_s0 + $0x4] sm:$0x1]  }
   0x7   :  { %s143_s13 = smov 40   ;;  %s144_s14 = smov 32   ;;  %v115_v13 = vld [vmem:[%s209_s0 + $0x3] sm:$0x1]   ;;  %v116_v14 = vld [vmem:[%s209_s0 + $0x2] sm:$0x1]  }
   0x8   :  { %s145_s19 = smov 24   ;;  %s146_s20 = smov 16   ;;  %v117_v15 = vld [vmem:[%s209_s0 + $0x1] sm:$0x1]   ;;  %vm27_vm4 = vcmask 851712   ;;  %vm33_vm5 = vcmask 786112  }
   0x9   :  { %s147_s0 = smov 8   ;;  %vm39_vm6 = vcmask 720512   ;;  %vm45_vm7 = vcmask 654912   ;;  %vm51_vm8 = vcmask 589312   ;;  %vm57_vm9 = vcmask 523712  }
   0xa   :  { %31 = vrot.lane.b32.xlu0 %v107_v4, %s137_s24  ;;  %37 = vrot.lane.b32.xlu1 %v108_v5, %s138_s25  ;;  %vm63_vm10 = vcmask 458112   ;;  %vm69_vm11 = vcmask 392512   ;;  %vm75_vm12 = vcmask 326912   ;;  %vm81_vm13 = vcmask 261312  }
   0xb   :  { %vm87_vm14 = vcmask 195712   ;;  %vm93_vm15 = vcmask 130112  }
   0xe   :  { %43 = vrot.lane.b32.xlu0 %v109_v7, %s139_s30  ;;  %49 = vrot.lane.b32.xlu1 %v110_v8, %s140_s2 }
  0x12   :  { %55 = vrot.lane.b32.xlu0 %v111_v9, %s141_s7  ;;  %61 = vrot.lane.b32.xlu1 %v112_v10, %s142_s8 }
  0x16   :  { %67 = vrot.lane.b32.xlu0 %v113_v11, %s143_s13  ;;  %73 = vrot.lane.b32.xlu1 %v114_v12, %s144_s14 }
  0x1a   :  { %79 = vrot.lane.b32.xlu0 %v115_v13, %s145_s19  ;;  %85 = vrot.lane.b32.xlu1 %v116_v14, %s146_s20 }
  0x1e   :  { %91 = vrot.lane.b32.xlu0 %v117_v15, %s147_s0 }
  0x74   :  { %v8_v16 = vpop.permute.xlu0 %7   ;;  %v20_v17 = vpop.permute.xlu1 %19  }
  0x75   :  { %10 = vst.msk [vmem:[#allocation0] sm:$0x1] %vm9_vm1, %v8_v16  }
  0x78   :  { %v14_v18 = vpop.permute.xlu0 %13   ;;  %v26_v19 = vpop.permute.xlu1 %25  }
  0x79   :  { %16 = vst.msk [vmem:[#allocation0] sm:$0x1] %vm15_vm2, %v14_v18  }
  0x7a   :  { %22 = vst.msk [vmem:[#allocation0] sm:$0x1] %vm21_vm3, %v20_v17  }
  0x7b   :  { %28 = vst.msk [vmem:[#allocation0] sm:$0x1] %vm27_vm4, %v26_v19  }
  0x7c   :  { %v32_v20 = vpop.permute.xlu0 %31   ;;  %v38_v21 = vpop.permute.xlu1 %37  }
  0x7d   :  { %34 = vst.msk [vmem:[#allocation0] sm:$0x1] %vm33_vm5, %v32_v20  }
  0x7e   :  { %40 = vst.msk [vmem:[#allocation0] sm:$0x1] %vm39_vm6, %v38_v21  }
  0x80   :  { %v44_v22 = vpop.permute.xlu0 %43   ;;  %v50_v23 = vpop.permute.xlu1 %49  }
  0x81   :  { %46 = vst.msk [vmem:[#allocation0] sm:$0x1] %vm45_vm7, %v44_v22  }
  0x82   :  { %52 = vst.msk [vmem:[#allocation0] sm:$0x1] %vm51_vm8, %v50_v23  }
  0x84   :  { %v56_v24 = vpop.permute.xlu0 %55   ;;  %v62_v25 = vpop.permute.xlu1 %61  }
  0x85   :  { %58 = vst.msk [vmem:[#allocation0] sm:$0x1] %vm57_vm9, %v56_v24  }
  0x86   :  { %64 = vst.msk [vmem:[#allocation0] sm:$0x1] %vm63_vm10, %v62_v25  }
  0x88   :  { %v68_v26 = vpop.permute.xlu0 %67   ;;  %v74_v27 = vpop.permute.xlu1 %73  }
  0x89   :  { %70 = vst.msk [vmem:[#allocation0] sm:$0x1] %vm69_vm11, %v68_v26  }
  0x8a   :  { %76 = vst.msk [vmem:[#allocation0] sm:$0x1] %vm75_vm12, %v74_v27  }
  0x8c   :  { %v80_v28 = vpop.permute.xlu0 %79   ;;  %v86_v29 = vpop.permute.xlu1 %85  }
  0x8d   :  { %82 = vst.msk [vmem:[#allocation0] sm:$0x1] %vm81_vm13, %v80_v28  }
  0x8e   :  { %88 = vst.msk [vmem:[#allocation0] sm:$0x1] %vm87_vm14, %v86_v29  }
  0x90   :  { %v92_v30 = vpop.permute.xlu0 %91  }
  0x91   :  { %94 = vst.msk [vmem:[#allocation0] sm:$0x1] %vm93_vm15, %v92_v30  }
  0x98   :  { %v99_v31 = vld [vmem:[#allocation0] sm:$0x1] }
  0x99   :  { %102 = vst [vmem:[%s210_s1] sm:$0x1] %v99_v31 }

// kernel: double_conv_pallas.3
= control target key start
LH: loop header
LB: loop body
LE: loop exit
PB: predicated region body
PF: predicated region fallthrough
CT: control target
= control target key end

     0   :  { %s937_s15 = smov 0   ;;  %s1059_s0 = inlined_call_operand.vmem [shape: f32[2,16,64], index: 0, kind: input, shape index: {}]   ;;  %s1060_s1 = inlined_call_operand.vmem [shape: f32[3,64,128], index: 1, kind: input, shape index: {}]   ;;  %s1061_s2 = inlined_call_operand.vmem [shape: f32[2,16,16], index: 2, kind: input, shape index: {}]   ;;  %s1062_s3 = inlined_call_operand.vmem [shape: f32[2,16,128], index: 3, kind: output, shape index: {0}]   ;;  %s1063_s4 = inlined_call_operand.vmem [shape: f32[2,2,128], index: 4, kind: output, shape index: {1}]  }
   0x1 LB: > { %s745_s16 = sadd.s32 4294967295, %s910_s15   ;;  %p749_p0 = scmp.ge.s32.totalorder %s910_s15, 1  ;;  %s910_s15 = sphi %s937_s15, %s15_s15  }
   0x2   : > { %p165_p1 = scmp.lt.s32.totalorder %s910_s15, 3 }
   0x4   : > { %p166_p2 = pnand %p749_p0, %p165_p1 }
   0x5   : > { %p195_p3 = scmp.lt.s32.totalorder (!%p166_p2), %s745_s16, 1 }
   0x6   : > { %169 = sbr.rel (%p166_p2) target bundleno = 443 (0x1bb), region = 32 }
   0xb   : > { %v218_v0 = vld [vmem:[%s1060_s1 + $0x38] sm:$0xff]  ;;  %v217_v1 = vld [vmem:[%s1060_s1 + $0x30] sm:$0xff]  ;;  %v216_v4 = vld [vmem:[%s1060_s1 + $0x28] sm:$0xff]  ;;  %s1065_s16 = smov (!%p195_p3, %s745_s16), 1  ;;  %vm219_vm0 = vcmask 523264   ;;  %vm396_vm1 = vcmask 130048  }
   0xc   : > { %v772_v2 = vld [vmem:[%s1060_s1 + $0xb8] sm:$0xff]  ;;  %825 = vmatprep.subr.mxu0 %v218_v0  ;;  %v771_v3 = vld [vmem:[%s1060_s1 + $0xb0] sm:$0xff]  ;;  %v770_v5 = vld [vmem:[%s1060_s1 + $0xa8] sm:$0xff]  ;;  %s785_s7 = sshll.u32 %s1065_s16, 4  ;;  %s754_s8 = sshll.u32 %s1065_s16, 1 }
   0xd   : > { %844 = vmatprep.subr.mxu1 %v772_v2  ;;  %826 = vmatpush3.msra.mxu0 %v218_v0  ;;  %v215_v6 = vld [vmem:[%s1060_s1 + $0x20] sm:$0xff]  ;;  %v214_v8 = vld [vmem:[%s1060_s1 + $0x18] sm:$0xff]  ;;  %v213_v10 = vld [vmem:[%s1060_s1 + $0x10] sm:$0xff]  ;;  %s199_s20 = scalar_lea.vmem %s1059_s0, %s785_s7  ;;  %s204_s6 = scalar_lea.vmem %s1062_s3, %s785_s7 }
   0xe   : > { %845 = vmatpush3.msra.mxu1 %v772_v2  ;;  %827 = vmatprep.subr.mxu0 %v217_v1  ;;  %v769_v7 = vld [vmem:[%s1060_s1 + $0xa0] sm:$0xff]  ;;  %v768_v9 = vld [vmem:[%s1060_s1 + $0x98] sm:$0xff]  ;;  %v767_v11 = vld [vmem:[%s1060_s1 + $0x90] sm:$0xff]  ;;  %s208_s10 = scalar_lea.vmem %s1063_s4, %s754_s8 }
   0xf   : > { %846 = vmatprep.subr.mxu1 %v771_v3  ;;  %828 = vmatpush3.msra.mxu0 %v217_v1  ;;  %v212_v12 = vld [vmem:[%s1060_s1 + $0x8] sm:$0xff]  ;;  %v209_v14 = vld [vmem:[%s199_s20] sm:$0xff]  ;;  %v764_v18 = vld [vmem:[%s1060_s1 + $0x78] sm:$0xff] }
  0x10   : > { %847 = vmatpush3.msra.mxu1 %v771_v3  ;;  %829 = vmatprep.subr.mxu0 %v216_v4  ;;  %v766_v13 = vld [vmem:[%s1060_s1 + $0x88] sm:$0xff]  ;;  %v211_v15 = vld [vmem:[%s1060_s1] sm:$0xff]  ;;  %v763_v19 = vld [vmem:[%s1060_s1 + $0x70] sm:$0xff] }
  0x11   : > { %848 = vmatprep.subr.mxu1 %v770_v5  ;;  %830 = vmatpush3.msra.mxu0 %v216_v4  ;;  %v765_v16 = vld [vmem:[%s1060_s1 + $0x80] sm:$0xff]  ;;  %v210_v17 = vld [vmem:[%s199_s20 + $0x8] sm:$0xff]  ;;  %v760_v22 = vld [vmem:[%s1060_s1 + $0x58] sm:$0xff] }
  0x12   : > { %849 = vmatpush3.msra.mxu1 %v770_v5  ;;  %831 = vmatprep.subr.mxu0 %v215_v6  ;;  %v762_v20 = vld [vmem:[%s1060_s1 + $0x68] sm:$0xff]  ;;  %v761_v21 = vld [vmem:[%s1060_s1 + $0x60] sm:$0xff]  ;;  %v759_v23 = vld [vmem:[%s1060_s1 + $0x50] sm:$0xff] }
  0x13   : > { %850 = vmatprep.subr.mxu1 %v769_v7  ;;  %832 = vmatpush3.msra.mxu0 %v215_v6  ;;  %v758_v24 = vld [vmem:[%s1060_s1 + $0x48] sm:$0xff]  ;;  %v757_v25 = vld [vmem:[%s1060_s1 + $0x40] sm:$0xff]  ;;  %v779_v31 = vld [vmem:[%s1061_s2 + $0x10] sm:$0xff] }
  0x14   : > { %851 = vmatpush3.msra.mxu1 %v769_v7  ;;  %833 = vmatprep.subr.mxu0 %v214_v8  ;;  %v394_v26 = vld [vmem:[%s1061_s2] sm:$0xff]  ;;  %v395_v30 = vld [vmem:[%s1061_s2 + $0x8] sm:$0xff]  ;;  %v780_v33 = vld [vmem:[%s1061_s2 + $0x18] sm:$0xff] }
  0x15   : > { %852 = vmatprep.subr.mxu1 %v768_v9  ;;  %834 = vmatpush3.msra.mxu0 %v214_v8 }
  0x16   : > { %853 = vmatpush3.msra.mxu1 %v768_v9  ;;  %835 = vmatprep.subr.mxu0 %v213_v10 }
  0x17   : > { %854 = vmatprep.subr.mxu1 %v767_v11  ;;  %836 = vmatpush3.msra.mxu0 %v213_v10 }
  0x18   : > { %855 = vmatpush3.msra.mxu1 %v767_v11  ;;  %837 = vmatprep.subr.mxu0 %v212_v12 }
  0x19   : > { %856 = vmatprep.subr.mxu1 %v766_v13  ;;  %838 = vmatpush3.msra.mxu0 %v212_v12 }
  0x1a   : > { %841 = vmatprep.mubr.msk.f32.mxu0 %vm219_vm0, %v209_v14  ;;  %839 = vmatprep.subr.mxu0 %v211_v15 }
  0x1b   : > { %857 = vmatpush3.msra.mxu1 %v766_v13  ;;  %840 = vmatpush3.msra.mxu0 %v211_v15 }
  0x1c   : > { %858 = vmatprep.subr.mxu1 %v765_v16  ;;  %842 = vmatmul.mubr.msk.f32.vlgmr.msra.gmra.mxu0 %vm219_vm0, %v210_v17 }
  0x1d   : > { %859 = vmatpush3.msra.mxu1 %v765_v16  ;;  %860 = vmatprep.mubr.msk.f32.mxu1 %vm219_vm0, %v209_v14 }
  0x1e   : > { %870 = vmatprep.subr.mxu1 %v764_v18  ;;  %861 = vmatmul.mubr.msk.f32.vlgmr.msra.gmra.mxu1 %vm219_vm0, %v210_v17 }
  0x1f   : > { %871 = vmatpush3.msra.mxu1 %v764_v18  ;;  %886 = vmatprep.mubr.msk.f32.mxu1 %vm219_vm0, %v209_v14 }
  0x20   : > { %872 = vmatprep.subr.mxu1 %v763_v19  ;;  %867 = vmatprep.mubr.msk.f32.mxu0 %vm396_vm1, %v394_v26 }
  0x21   : > { %873 = vmatpush3.msra.mxu1 %v763_v19 }
  0x22   : > { %874 = vmatprep.subr.mxu1 %v762_v20 }
  0x23   : > { %875 = vmatpush3.msra.mxu1 %v762_v20 }
  0x24   : > { %876 = vmatprep.subr.mxu1 %v761_v21 }
  0x25   : > { %877 = vmatpush3.msra.mxu1 %v761_v21 }
  0x26   : > { %878 = vmatprep.subr.mxu1 %v760_v22 }
  0x27   : > { %879 = vmatpush3.msra.mxu1 %v760_v22 }
  0x28   : > { %880 = vmatprep.subr.mxu1 %v759_v23 }
  0x29   : > { %881 = vmatpush3.msra.mxu1 %v759_v23 }
  0x2a   : > { %882 = vmatprep.subr.mxu1 %v758_v24 }
  0x2b   : > { %883 = vmatpush3.msra.mxu1 %v758_v24 }
  0x2c   : > { %884 = vmatprep.subr.mxu1 %v757_v25 }
  0x2d   : > { %885 = vmatpush3.msra.mxu1 %v757_v25 }
  0x2e   : > { %887 = vmatmul.mubr.msk.f32.vlgmr.msra.gmra.mxu1 %vm219_vm0, %v210_v17 }
  0xdc   : > { %v843_v27 = vpop.f32.mrf.mxu0 }
  0xdd   : > { %863 = vmatprep.subr.mxu0 %v843_v27 }
  0xde   : > { %v292_v28 = vpop.f32.mrf.mxu0  ;;  %v862_v29 = vpop.f32.mrf.mxu1  ;;  %864 = vmatpush3.msra.mxu0 %v843_v27 }
  0xdf   : > { %865 = vmatprep.subr.mxu0 %v292_v28 }
  0xe0   : > { %866 = vmatpush3.msra.mxu0 %v292_v28  ;;  %v385_v32 = vpop.f32.mrf.mxu1 }
  0xe1   : > { %868 = vmatmul.mubr.msk.f32.vlgmr.msra.gmra.mxu0 %vm396_vm1, %v395_v30  ;;  %889 = vmatprep.subr.mxu0 %v862_v29 }
  0xe2   : > { %890 = vmatpush3.msra.mxu0 %v862_v29  ;;  %893 = vmatprep.mubr.msk.f32.mxu0 %vm396_vm1, %v779_v31 }
  0xe3   : > { %891 = vmatprep.subr.mxu0 %v385_v32 }
  0xe4   : > { %892 = vmatpush3.msra.mxu0 %v385_v32 }
  0xe5   : > { %894 = vmatmul.mubr.msk.f32.vlgmr.msra.gmra.mxu0 %vm396_vm1, %v780_v33 }
  0xee   : > { %v888_v34 = vpop.f32.mrf.mxu1 }
  0xf0   : > { %v544_v37 = vpop.f32.mrf.mxu1 }
 0x1a1   : > { %v869_v35 = vpop.f32.mrf.mxu0 }
 0x1a2   : > { %v550_v38 = vadd.f32 %v888_v34, %v869_v35 }
 0x1a3   : > { %v469_v36 = vpop.f32.mrf.mxu0 }
 0x1a4   : > { %v545_v40 = vadd.f32 %v544_v37, %v469_v36 }
 0x1a5   : > { %v895_v39 = vpop.f32.mrf.mxu0 }
 0x1a6   : > { %v638_v41 = vadd.f32 %v895_v39, %v550_v38 }
 0x1a7   : > { %v628_v42 = vpop.f32.mrf.mxu0 }
 0x1a8   : > { %640 = vst [vmem:[%s204_s6 + $0x8] sm:$0xff] %v638_v41  ;;  %v637_v43 = vadd.f32 %v628_v42, %v545_v40  ;;  %v650_v44 = vmul.f32 %v638_v41, %v638_v41 }
 0x1aa   : > { %639 = vst [vmem:[%s204_s6] sm:$0xff] %v637_v43  ;;  %v641_v45 = vadd.f32 %v638_v41, %v637_v43  ;;  %v649_v46 = vmul.f32 %v637_v43, %v637_v43 }
 0x1ac   : > { %v642_v47 = vrot.slane %v641_v45, 4  ;;  %v651_v48 = vadd.f32 %v650_v44, %v649_v46 }
 0x1ae   : > { %v643_v49 = vadd.f32 %v642_v47, %v641_v45  ;;  %v652_v50 = vrot.slane %v651_v48, 4 }
 0x1b0   : > { %v644_v51 = vrot.slane %v643_v49, 2  ;;  %v653_v52 = vadd.f32 %v652_v50, %v651_v48 }
 0x1b2   : > { %v645_v53 = vadd.f32 %v644_v51, %v643_v49  ;;  %v654_v54 = vrot.slane %v653_v52, 2 }
 0x1b4   : > { %v646_v55 = vrot.slane %v645_v53, 1  ;;  %v655_v56 = vadd.f32 %v654_v54, %v653_v52 }
 0x1b6   : > { %v647_v57 = vadd.f32 %v646_v55, %v645_v53  ;;  %v656_v58 = vrot.slane %v655_v56, 1 }
 0x1b8   : > { %648 = vst [vmem:[%s208_s10] sm:$0x1] %v647_v57  ;;  %v657_v59 = vadd.f32 %v656_v58, %v655_v56 }
 0x1ba   : > { %658 = vst [vmem:[%s208_s10 + $0x1] sm:$0x1] %v657_v59 }
 0x1bb PF: > { %s15_s15 = sadd.s32 1, %s910_s15  }
 0x1bc   : > { %p12_p4 = scmp.ge.s32.totalorder %s15_s15, 4  }
 0x1be   :  { %14 = sbr.rel (!%p12_p4) target bundleno = 1 (0x1), region = 77 }

// kernel: double_conv_pallas.4
= control target key start
LH: loop header
LB: loop body
LE: loop exit
PB: predicated region body
PF: predicated region fallthrough
CT: control target
= control target key end

     0   :  { %s1122_s21 = smov 0   ;;  %s1321_s0 = inlined_call_operand.vmem [shape: f32[2,16,128], index: 0, kind: input, shape index: {}]   ;;  %s1322_s1 = inlined_call_operand.vmem [shape: f32[3,128,128], index: 1, kind: input, shape index: {}]   ;;  %s1323_s2 = inlined_call_operand.vmem [shape: f32[2,16,16], index: 2, kind: input, shape index: {}]   ;;  %s1324_s3 = inlined_call_operand.vmem [shape: f32[1,128], index: 3, kind: input, shape index: {}]   ;;  %s1325_s4 = inlined_call_operand.vmem [shape: f32[1,128], index: 4, kind: input, shape index: {}]   ;;  %s1326_s5 = inlined_call_operand.vmem [shape: f32[2,16,128], index: 5, kind: output, shape index: {0}]   ;;  %s1327_s6 = inlined_call_operand.vmem [shape: f32[2,2,128], index: 6, kind: output, shape index: {1}]  }
   0x1 LB: > { %s836_s22 = sadd.s32 4294967295, %s1085_s21   ;;  %p840_p0 = scmp.ge.s32.totalorder %s1085_s21, 1  ;;  %s1085_s21 = sphi %s1122_s21, %s17_s21  }
   0x2   : > { %p215_p1 = scmp.lt.s32.totalorder %s1085_s21, 3 }
   0x4   : > { %p216_p2 = pnand %p840_p0, %p215_p1 }
   0x5   : > { %p249_p3 = scmp.lt.s32.totalorder (!%p216_p2), %s836_s22, 1 }
   0x6   : > { %219 = sbr.rel (%p216_p2) target bundleno = 459 (0x1cb), region = 40 }
   0xb   : > { %v300_v0 = vld [vmem:[%s1322_s1 + $0x78] sm:$0xff]  ;;  %v299_v1 = vld [vmem:[%s1322_s1 + $0x70] sm:$0xff]  ;;  %v298_v4 = vld [vmem:[%s1322_s1 + $0x68] sm:$0xff]  ;;  %s1329_s22 = smov (!%p249_p3, %s836_s22), 1  ;;  %vm487_vm0 = vcmask 130048  }
   0xc   : > { %v879_v2 = vld [vmem:[%s1322_s1 + $0x178] sm:$0xff]  ;;  %952 = vmatprep.subr.mxu0 %v300_v0  ;;  %v878_v3 = vld [vmem:[%s1322_s1 + $0x170] sm:$0xff]  ;;  %v877_v5 = vld [vmem:[%s1322_s1 + $0x168] sm:$0xff]  ;;  %s888_s25 = sshll.u32 %s1329_s22, 4  ;;  %s845_s8 = sshll.u32 %s1329_s22, 1 }
   0xd   : > { %987 = vmatprep.subr.mxu1 %v879_v2  ;;  %953 = vmatpush3.msra.mxu0 %v300_v0  ;;  %v297_v6 = vld [vmem:[%s1322_s1 + $0x60] sm:$0xff]  ;;  %v296_v8 = vld [vmem:[%s1322_s1 + $0x58] sm:$0xff]  ;;  %v295_v10 = vld [vmem:[%s1322_s1 + $0x50] sm:$0xff]  ;;  %s253_s12 = scalar_lea.vmem %s1321_s0, %s888_s25  ;;  %s258_s7 = scalar_lea.vmem %s1326_s5, %s888_s25 }
   0xe   : > { %988 = vmatpush3.msra.mxu1 %v879_v2  ;;  %954 = vmatprep.subr.mxu0 %v299_v1  ;;  %v876_v7 = vld [vmem:[%s1322_s1 + $0x160] sm:$0xff]  ;;  %v875_v9 = vld [vmem:[%s1322_s1 + $0x158] sm:$0xff]  ;;  %v874_v11 = vld [vmem:[%s1322_s1 + $0x150] sm:$0xff]  ;;  %s262_s10 = scalar_lea.vmem %s1327_s6, %s845_s8 }
   0xf   : > { %989 = vmatprep.subr.mxu1 %v878_v3  ;;  %955 = vmatpush3.msra.mxu0 %v299_v1  ;;  %v294_v12 = vld [vmem:[%s1322_s1 + $0x48] sm:$0xff]  ;;  %v293_v14 = vld [vmem:[%s1322_s1 + $0x40] sm:$0xff]  ;;  %v292_v16 = vld [vmem:[%s1322_s1 + $0x38] sm:$0xff] }
  0x10   : > { %990 = vmatpush3.msra.mxu1 %v878_v3  ;;  %956 = vmatprep.subr.mxu0 %v298_v4  ;;  %v873_v13 = vld [vmem:[%s1322_s1 + $0x148] sm:$0xff]  ;;  %v872_v15 = vld [vmem:[%s1322_s1 + $0x140] sm:$0xff]  ;;  %v871_v17 = vld [vmem:[%s1322_s1 + $0x138] sm:$0xff] }
  0x11   : > { %991 = vmatprep.subr.mxu1 %v877_v5  ;;  %957 = vmatpush3.msra.mxu0 %v298_v4  ;;  %v263_v18 = vld [vmem:[%s253_s12] sm:$0xff]  ;;  %v291_v20 = vld [vmem:[%s1322_s1 + $0x30] sm:$0xff]  ;;  %v290_v22 = vld [vmem:[%s1322_s1 + $0x28] sm:$0xff] }
  0x12   : > { %992 = vmatpush3.msra.mxu1 %v877_v5  ;;  %958 = vmatprep.subr.mxu0 %v297_v6  ;;  %v846_v19 = vld [vmem:[%s1324_s3] ss:$0 sm:$0xff]  ;;  %v870_v21 = vld [vmem:[%s1322_s1 + $0x130] sm:$0xff]  ;;  %v869_v23 = vld [vmem:[%s1322_s1 + $0x128] sm:$0xff] }
  0x13   : > { %993 = vmatprep.subr.mxu1 %v876_v7  ;;  %959 = vmatpush3.msra.mxu0 %v297_v6  ;;  %v272_v24 = vmul.f32 %v846_v19, %v263_v18  ;;  %v264_v25 = vld [vmem:[%s253_s12 + $0x8] sm:$0xff]  ;;  %v847_v26 = vld [vmem:[%s1325_s4] ss:$0 sm:$0xff]  ;;  %v288_v30 = vld [vmem:[%s1322_s1 + $0x18] sm:$0xff] }
  0x14   : > { %994 = vmatpush3.msra.mxu1 %v876_v7  ;;  %960 = vmatprep.subr.mxu0 %v296_v8  ;;  %v289_v27 = vld [vmem:[%s1322_s1 + $0x20] sm:$0xff]  ;;  %v273_v29 = vmul.f32 %v846_v19, %v264_v25  ;;  %v867_v31 = vld [vmem:[%s1322_s1 + $0x118] sm:$0xff]  ;;  %v287_v33 = vld [vmem:[%s1322_s1 + $0x10] sm:$0xff] }
  0x15   : > { %995 = vmatprep.subr.mxu1 %v875_v9  ;;  %961 = vmatpush3.msra.mxu0 %v296_v8  ;;  %v868_v28 = vld [vmem:[%s1322_s1 + $0x120] sm:$0xff]  ;;  %v281_v32 = vadd.f32 %v847_v26, %v272_v24  ;;  %v866_v34 = vld [vmem:[%s1322_s1 + $0x110] sm:$0xff]  ;;  %v286_v36 = vld [vmem:[%s1322_s1 + $0x8] sm:$0xff] }
  0x16   : > { %996 = vmatpush3.msra.mxu1 %v875_v9  ;;  %962 = vmatprep.subr.mxu0 %v295_v10  ;;  %v282_v35 = vadd.f32 %v847_v26, %v273_v29  ;;  %v865_v37 = vld [vmem:[%s1322_s1 + $0x108] sm:$0xff]  ;;  %v285_v39 = vld [vmem:[%s1322_s1] sm:$0xff]  ;;  %v863_v42 = vld [vmem:[%s1322_s1 + $0xf8] sm:$0xff] }
  0x17   : > { %997 = vmatprep.subr.mxu1 %v874_v11  ;;  %963 = vmatpush3.msra.mxu0 %v295_v10  ;;  %v283_v38 = vmax.f32 %v281_v32, 0.0  ;;  %v864_v41 = vld [vmem:[%s1322_s1 + $0x100] sm:$0xff]  ;;  %v862_v43 = vld [vmem:[%s1322_s1 + $0xf0] sm:$0xff]  ;;  %v861_v44 = vld [vmem:[%s1322_s1 + $0xe8] sm:$0xff] }
  0x18   : > { %998 = vmatpush3.msra.mxu1 %v874_v11  ;;  %964 = vmatprep.subr.mxu0 %v294_v12  ;;  %v1237_v40 = vmax.f32 %v282_v35, 0.0  ;;  %v860_v45 = vld [vmem:[%s1322_s1 + $0xe0] sm:$0xff]  ;;  %v859_v46 = vld [vmem:[%s1322_s1 + $0xd8] sm:$0xff]  ;;  %v858_v47 = vld [vmem:[%s1322_s1 + $0xd0] sm:$0xff] }
  0x19   : > { %999 = vmatprep.subr.mxu1 %v873_v13  ;;  %965 = vmatpush3.msra.mxu0 %v294_v12  ;;  %v857_v48 = vld [vmem:[%s1322_s1 + $0xc8] sm:$0xff]  ;;  %v856_v49 = vld [vmem:[%s1322_s1 + $0xc0] sm:$0xff]  ;;  %v855_v50 = vld [vmem:[%s1322_s1 + $0xb8] sm:$0xff] }
  0x1a   : > { %1000 = vmatpush3.msra.mxu1 %v873_v13  ;;  %966 = vmatprep.subr.mxu0 %v293_v14  ;;  %v854_v51 = vld [vmem:[%s1322_s1 + $0xb0] sm:$0xff]  ;;  %v853_v52 = vld [vmem:[%s1322_s1 + $0xa8] sm:$0xff]  ;;  %v852_v53 = vld [vmem:[%s1322_s1 + $0xa0] sm:$0xff] }
  0x1b   : > { %1001 = vmatprep.subr.mxu1 %v872_v15  ;;  %967 = vmatpush3.msra.mxu0 %v293_v14  ;;  %v851_v54 = vld [vmem:[%s1322_s1 + $0x98] sm:$0xff]  ;;  %v850_v55 = vld [vmem:[%s1322_s1 + $0x90] sm:$0xff]  ;;  %v849_v56 = vld [vmem:[%s1322_s1 + $0x88] sm:$0xff] }
  0x1c   : > { %1002 = vmatpush3.msra.mxu1 %v872_v15  ;;  %968 = vmatprep.subr.mxu0 %v292_v16  ;;  %v848_v57 = vld [vmem:[%s1322_s1 + $0x80] sm:$0xff]  ;;  %v486_v62 = vld [vmem:[%s1323_s2 + $0x8] sm:$0xff]  ;;  %v882_v63 = vld [vmem:[%s1323_s2 + $0x10] sm:$0xff] }
  0x1d   : > { %1003 = vmatprep.subr.mxu1 %v871_v17  ;;  %969 = vmatpush3.msra.mxu0 %v292_v16  ;;  %v485_v58 = vld [vmem:[%s1323_s2] sm:$0xff]  ;;  %v883_v1 = vld [vmem:[%s1323_s2 + $0x18] sm:$0xff] }
  0x1e   : > { %1004 = vmatpush3.msra.mxu1 %v871_v17  ;;  %970 = vmatprep.subr.mxu0 %v291_v20 }
  0x1f   : > { %1005 = vmatprep.subr.mxu1 %v870_v21  ;;  %971 = vmatpush3.msra.mxu0 %v291_v20 }
  0x20   : > { %1006 = vmatpush3.msra.mxu1 %v870_v21  ;;  %972 = vmatprep.subr.mxu0 %v290_v22 }
  0x21   : > { %1007 = vmatprep.subr.mxu1 %v869_v23  ;;  %973 = vmatpush3.msra.mxu0 %v290_v22 }
  0x22   : > { %1008 = vmatpush3.msra.mxu1 %v869_v23  ;;  %974 = vmatprep.subr.mxu0 %v289_v27 }
  0x23   : > { %1009 = vmatprep.subr.mxu1 %v868_v28  ;;  %975 = vmatpush3.msra.mxu0 %v289_v27 }
  0x24   : > { %1010 = vmatpush3.msra.mxu1 %v868_v28  ;;  %976 = vmatprep.subr.mxu0 %v288_v30 }
  0x25   : > { %1011 = vmatprep.subr.mxu1 %v867_v31  ;;  %977 = vmatpush3.msra.mxu0 %v288_v30 }
  0x26   : > { %1012 = vmatpush3.msra.mxu1 %v867_v31  ;;  %978 = vmatprep.subr.mxu0 %v287_v33 }
  0x27   : > { %1013 = vmatprep.subr.mxu1 %v866_v34  ;;  %979 = vmatpush3.msra.mxu0 %v287_v33 }
  0x28   : > { %1014 = vmatpush3.msra.mxu1 %v866_v34  ;;  %980 = vmatprep.subr.mxu0 %v286_v36 }
  0x29   : > { %1015 = vmatprep.subr.mxu1 %v865_v37  ;;  %981 = vmatpush3.msra.mxu0 %v286_v36 }
  0x2a   : > { %984 = vmatprep.mubr.f32.mxu0 %v283_v38  ;;  %982 = vmatprep.subr.mxu0 %v285_v39 }
  0x2b   : > { %1016 = vmatpush3.msra.mxu1 %v865_v37  ;;  %983 = vmatpush3.msra.mxu0 %v285_v39 }
  0x2c   : > { %1017 = vmatprep.subr.mxu1 %v864_v41  ;;  %985 = vmatmul.mubr.f32.vlgmr.msra.gmra.mxu0 %v1237_v40 }
  0x2d   : > { %1018 = vmatpush3.msra.mxu1 %v864_v41  ;;  %1019 = vmatprep.mubr.f32.mxu1 %v283_v38 }
  0x2e   : > { %1029 = vmatprep.subr.mxu1 %v863_v42  ;;  %1020 = vmatmul.mubr.f32.vlgmr.msra.gmra.mxu1 %v1237_v40 }
  0x2f   : > { %1030 = vmatpush3.msra.mxu1 %v863_v42  ;;  %1061 = vmatprep.mubr.f32.mxu1 %v283_v38 }
  0x30   : > { %1031 = vmatprep.subr.mxu1 %v862_v43  ;;  %1026 = vmatprep.mubr.msk.f32.mxu0 %vm487_vm0, %v485_v58 }
  0x31   : > { %1032 = vmatpush3.msra.mxu1 %v862_v43 }
  0x32   : > { %1033 = vmatprep.subr.mxu1 %v861_v44 }
  0x33   : > { %1034 = vmatpush3.msra.mxu1 %v861_v44 }
  0x34   : > { %1035 = vmatprep.subr.mxu1 %v860_v45 }
  0x35   : > { %1036 = vmatpush3.msra.mxu1 %v860_v45 }
  0x36   : > { %1037 = vmatprep.subr.mxu1 %v859_v46 }
  0x37   : > { %1038 = vmatpush3.msra.mxu1 %v859_v46 }
  0x38   : > { %1039 = vmatprep.subr.mxu1 %v858_v47 }
  0x39   : > { %1040 = vmatpush3.msra.mxu1 %v858_v47 }
  0x3a   : > { %1041 = vmatprep.subr.mxu1 %v857_v48 }
  0x3b   : > { %1042 = vmatpush3.msra.mxu1 %v857_v48 }
  0x3c   : > { %1043 = vmatprep.subr.mxu1 %v856_v49 }
  0x3d   : > { %1044 = vmatpush3.msra.mxu1 %v856_v49 }
  0x3e   : > { %1045 = vmatprep.subr.mxu1 %v855_v50 }
  0x3f   : > { %1046 = vmatpush3.msra.mxu1 %v855_v50 }
  0x40   : > { %1047 = vmatprep.subr.mxu1 %v854_v51 }
  0x41   : > { %1048 = vmatpush3.msra.mxu1 %v854_v51 }
  0x42   : > { %1049 = vmatprep.subr.mxu1 %v853_v52 }
  0x43   : > { %1050 = vmatpush3.msra.mxu1 %v853_v52 }
  0x44   : > { %1051 = vmatprep.subr.mxu1 %v852_v53 }
  0x45   : > { %1052 = vmatpush3.msra.mxu1 %v852_v53 }
  0x46   : > { %1053 = vmatprep.subr.mxu1 %v851_v54 }
  0x47   : > { %1054 = vmatpush3.msra.mxu1 %v851_v54 }
  0x48   : > { %1055 = vmatprep.subr.mxu1 %v850_v55 }
  0x49   : > { %1056 = vmatpush3.msra.mxu1 %v850_v55 }
  0x4a   : > { %1057 = vmatprep.subr.mxu1 %v849_v56 }
  0x4b   : > { %1058 = vmatpush3.msra.mxu1 %v849_v56 }
  0x4c   : > { %1059 = vmatprep.subr.mxu1 %v848_v57 }
  0x4d   : > { %1060 = vmatpush3.msra.mxu1 %v848_v57 }
  0x4e   : > { %1062 = vmatmul.mubr.f32.vlgmr.msra.gmra.mxu1 %v1237_v40 }
  0xec   : > { %v986_v59 = vpop.f32.mrf.mxu0 }
  0xed   : > { %1022 = vmatprep.subr.mxu0 %v986_v59 }
  0xee   : > { %v367_v60 = vpop.f32.mrf.mxu0  ;;  %v1021_v61 = vpop.f32.mrf.mxu1  ;;  %1023 = vmatpush3.msra.mxu0 %v986_v59 }
  0xef   : > { %1024 = vmatprep.subr.mxu0 %v367_v60 }
  0xf0   : > { %1025 = vmatpush3.msra.mxu0 %v367_v60  ;;  %v476_v0 = vpop.f32.mrf.mxu1 }
  0xf1   : > { %1027 = vmatmul.mubr.msk.f32.vlgmr.msra.gmra.mxu0 %vm487_vm0, %v486_v62  ;;  %1064 = vmatprep.subr.mxu0 %v1021_v61 }
  0xf2   : > { %1065 = vmatpush3.msra.mxu0 %v1021_v61  ;;  %1068 = vmatprep.mubr.msk.f32.mxu0 %vm487_vm0, %v882_v63 }
  0xf3   : > { %1066 = vmatprep.subr.mxu0 %v476_v0 }
  0xf4   : > { %1067 = vmatpush3.msra.mxu0 %v476_v0 }
  0xf5   : > { %1069 = vmatmul.mubr.msk.f32.vlgmr.msra.gmra.mxu0 %vm487_vm0, %v883_v1 }
 0x10e   : > { %v1063_v2 = vpop.f32.mrf.mxu1 }
 0x110   : > { %v635_v5 = vpop.f32.mrf.mxu1 }
 0x1b1   : > { %v1028_v3 = vpop.f32.mrf.mxu0 }
 0x1b2   : > { %v641_v6 = vadd.f32 %v1063_v2, %v1028_v3 }
 0x1b3   : > { %v560_v4 = vpop.f32.mrf.mxu0 }
 0x1b4   : > { %v636_v8 = vadd.f32 %v635_v5, %v560_v4 }
 0x1b5   : > { %v1070_v7 = vpop.f32.mrf.mxu0 }
 0x1b6   : > { %v729_v9 = vadd.f32 %v1070_v7, %v641_v6 }
 0x1b7   : > { %v719_v10 = vpop.f32.mrf.mxu0 }
 0x1b8   : > { %731 = vst [vmem:[%s258_s7 + $0x8] sm:$0xff] %v729_v9  ;;  %v728_v11 = vadd.f32 %v719_v10, %v636_v8  ;;  %v741_v12 = vmul.f32 %v729_v9, %v729_v9 }
 0x1ba   : > { %730 = vst [vmem:[%s258_s7] sm:$0xff] %v728_v11  ;;  %v732_v13 = vadd.f32 %v729_v9, %v728_v11  ;;  %v740_v14 = vmul.f32 %v728_v11, %v728_v11 }
 0x1bc   : > { %v733_v15 = vrot.slane %v732_v13, 4  ;;  %v742_v16 = vadd.f32 %v741_v12, %v740_v14 }
 0x1be   : > { %v734_v17 = vadd.f32 %v733_v15, %v732_v13  ;;  %v743_v18 = vrot.slane %v742_v16, 4 }
 0x1c0   : > { %v735_v19 = vrot.slane %v734_v17, 2  ;;  %v744_v20 = vadd.f32 %v743_v18, %v742_v16 }
 0x1c2   : > { %v736_v21 = vadd.f32 %v735_v19, %v734_v17  ;;  %v745_v22 = vrot.slane %v744_v20, 2 }
 0x1c4   : > { %v737_v23 = vrot.slane %v736_v21, 1  ;;  %v746_v24 = vadd.f32 %v745_v22, %v744_v20 }
 0x1c6   : > { %v738_v25 = vadd.f32 %v737_v23, %v736_v21  ;;  %v747_v26 = vrot.slane %v746_v24, 1 }
 0x1c8   : > { %739 = vst [vmem:[%s262_s10] sm:$0x1] %v738_v25  ;;  %v748_v27 = vadd.f32 %v747_v26, %v746_v24 }
 0x1ca   : > { %749 = vst [vmem:[%s262_s10 + $0x1] sm:$0x1] %v748_v27 }
 0x1cb PF: > { %s17_s21 = sadd.s32 1, %s1085_s21  }
 0x1cc   : > { %p14_p4 = scmp.ge.s32.totalorder %s17_s21, 4  }
 0x1ce   :  { %16 = sbr.rel (!%p14_p4) target bundleno = 1 (0x1), region = 85 }

// kernel: double_conv_pallas.5
= control target key start
LH: loop header
LB: loop body
LE: loop exit
PB: predicated region body
PF: predicated region fallthrough
CT: control target
= control target key end

     0   :  { %s420_s12 = smov 0   ;;  %s422_s13 = smov 0   ;;  %s471_s0 = inlined_call_operand.vmem [shape: f32[2,16,128], index: 0, kind: input, shape index: {}]   ;;  %s472_s1 = inlined_call_operand.vmem [shape: f32[1,128], index: 1, kind: input, shape index: {}]   ;;  %s473_s2 = inlined_call_operand.vmem [shape: f32[1,128], index: 2, kind: input, shape index: {}]   ;;  %s474_s3 = inlined_call_operand.vmem [shape: f32[2,16,128], index: 3, kind: output, shape index: {}]  }
   0x1   :  { %s424_s14 = smov 0   ;;  %s426_s15 = smov 0  }
   0x2   :  { %s428_s16 = smov 0  }
   0x3 LB: > { %s22_s17 = sadd.s32 1, %s390_s14  ;;  %s25_s18 = sadd.s32 1, %s394_s15  ;;  %s398_s16 = sphi %s428_s16, %s13_s16   ;;  %s394_s15 = sphi %s426_s15, %s478_s15   ;;  %s390_s14 = sphi %s424_s14, %s477_s14   ;;  %s386_s13 = sphi %s422_s13, %s476_s13   ;;  %s382_s12 = sphi %s420_s12, %s475_s12  }
   0x4   : > { %p23_p0 = scmp.ge.s32.totalorder %s22_s17, 2  ;;  %p311_p1 = scmp.ge.s32.totalorder %s398_s16, 1 }
   0x5   : > { %p156_p2 = scmp.lt.s32.totalorder %s398_s16, 5 }
   0x6   : > { %s480_s17 = smov (%p23_p0, %s22_s17), 0  ;;  %s482_s18 = smov (!%p23_p0, %s25_s18), %s394_s15 }
   0x7   : > { %p157_p3 = pnand %p311_p1, %p156_p2  ;;  %p27_p4 = scmp.ge.s32.totalorder %s482_s18, 2 }
   0x8   : > { %p186_p5 = scmp.lt.s32.totalorder (!%p157_p3), %s386_s13, 1  ;;  %p188_p6 = scmp.lt.s32.totalorder (!%p157_p3), %s382_s12, 1 }
   0x9   : > { %s484_s18 = smov (%p27_p4, %s482_s18), 0  ;;  %160 = sbr.rel (%p157_p3) target bundleno = 27 (0x1b), region = 32 }
   0xe   : > { %s486_s13 = smov (!%p186_p5, %s386_s13), 1  ;;  %s488_s12 = smov (!%p188_p6, %s382_s12), 1  ;;  %v316_v0 = vld [vmem:[%s472_s1] ss:$0 sm:$0xff] }
   0xf   : > { %s312_s19 = sshll.u32 %s486_s13, 1  ;;  %v317_v2 = vld [vmem:[%s473_s2] ss:$0 sm:$0xff] }
  0x10   : > { %s191_s20 = sadd.s32 %s312_s19, %s488_s12 }
  0x11   : > { %s313_s21 = sshll.u32 %s191_s20, 3 }
  0x12   : > { %s193_s26 = scalar_lea.vmem %s471_s0, %s313_s21  ;;  %s201_s4 = scalar_lea.vmem %s474_s3, %s313_s21 }
  0x13   : > { %v202_v1 = vld [vmem:[%s193_s26] sm:$0xff] }
  0x14   : > { %v210_v3 = vmul.f32 %v316_v0, %v202_v1 }
  0x16   : > { %v218_v4 = vadd.f32 %v317_v2, %v210_v3 }
  0x18   : > { %v219_v5 = vmax.f32 %v218_v4, 0.0 }
  0x1a   : > { %220 = vst [vmem:[%s201_s4] sm:$0xff] %v219_v5 }
  0x1b PF: > { %s13_s16 = sadd.s32 1, %s398_s16   ;;  %s475_s12 = smov %s390_s14 }
  0x1c   : > { %p10_p7 = scmp.ge.s32.totalorder %s13_s16, 6   ;;  %s476_s13 = smov %s394_s15 }
  0x1d   : > { %s477_s14 = smov %s480_s17  ;;  %s478_s15 = smov %s484_s18 }
  0x1e   :  { %12 = sbr.rel (!%p10_p7) target bundleno = 3 (0x3), region = 62 }

</bundles_post_ra>
